<compile_context>
chip_gen: v7x
topology: tpu7x:2x2x1
jax: 0.10.0
libtpu: 0.0.40
codegen_flags: <defaults>
</compile_context>

<pallas_src>
import functools

import jax
import jax.numpy as jnp
from jax.experimental import pallas as pl
from jax.experimental.pallas import tpu as pltpu


def _round_up(a, b):
    return ((a + b - 1) // b) * b


def feedforward_kernel(x_ref, w1_ref, b1_ref, w2_ref, b2_ref, o_ref, *, t_h):
    # x_ref:  (tm, dim_p)       f32  (cast to bf16 in-kernel)
    # w1_ref: (dim_p, hidden_p) bf16 (VMEM-resident, constant index_map)
    # b1_ref: (1, hidden_p)     f32
    # w2_ref: (hidden_p, dim_p) bf16 (VMEM-resident, constant index_map)
    # b2_ref: (1, dim_p)        f32
    # o_ref:  (tm, dim_p)       x.dtype
    xb = x_ref[...].astype(jnp.bfloat16)
    hidden_p = w1_ref.shape[1]
    n_chunks = hidden_p // t_h

    # Seed the accumulator with the output bias -> finalize is a pure cast.
    acc = jnp.broadcast_to(b2_ref[...].astype(jnp.float32), o_ref.shape)

    # Static chunk loop over the hidden dimension: bounds the (tm, t_h) f32
    # intermediate while keeping both GEMMs fused in one body.
    for c in range(n_chunks):
        lo = c * t_h
        # Linear1 chunk (MXU, f32 accumulation) + bias.
        h = jnp.dot(xb, w1_ref[:, lo:lo + t_h],
                    preferred_element_type=jnp.float32) + b1_ref[:, lo:lo + t_h]
        # Swish in f32 (EUP handles the sigmoid's exp).  Padded hidden columns
        # are harmless: Swish(0) = 0 and the corresponding W2 rows are zero.
        h = h * jax.nn.sigmoid(h)
        # Dropout(p=0.0) is identity at inference.
        # Linear2 partial product accumulated in f32 (MXU accumulate).
        acc = acc + jnp.dot(h.astype(jnp.bfloat16), w2_ref[lo:lo + t_h, :],
                            preferred_element_type=jnp.float32)

    o_ref[...] = acc.astype(o_ref.dtype)


def prepare_ff_params(w1, b1, w2, b2, *, t_h=1024):
    """Pad + cast weights ONCE (model init, not per call).

    w1: (dim, hidden), b1: (hidden,), w2: (hidden, dim), b2: (dim,)
    (weights stored transposed vs. nn.Linear's (out, in) so the kernel does
    x @ W)."""
    dim, hidden = w1.shape
    dim_p = _round_up(dim, 128)           # lane-dense output; 256 on v6e/v7x
    # is marginal and costs extra padding traffic for awkward dims, so keep 128.
    t_h_eff = min(t_h, _round_up(hidden, 128))
    hidden_p = _round_up(hidden, t_h_eff)
    if (dim_p, hidden_p) != (dim, hidden):
        w1 = jnp.pad(w1, ((0, dim_p - dim), (0, hidden_p - hidden)))
        w2 = jnp.pad(w2, ((0, hidden_p - hidden), (0, dim_p - dim)))
        b1 = jnp.pad(b1, (0, hidden_p - hidden))
        b2 = jnp.pad(b2, (0, dim_p - dim))
    return dict(
        w1=w1.astype(jnp.bfloat16),
        b1=b1.reshape(1, hidden_p).astype(jnp.float32),
        w2=w2.astype(jnp.bfloat16),
        b2=b2.reshape(1, dim_p).astype(jnp.float32),
        dim=dim, dim_p=dim_p, hidden_p=hidden_p, t_h=t_h_eff)


def feedforward(x, params, *, tm=512):
    """x: (batch, seq, dim) f32.  params: output of prepare_ff_params()."""
    batch, seq, dim = x.shape
    assert dim == params["dim"]
    dim_p, hidden_p, t_h = params["dim_p"], params["hidden_p"], params["t_h"]
    m = batch * seq

    # Row tile: cap at the (8-aligned) row count; ensure >=2 row tiles when
    # possible so the "parallel" axis can shard across v7x's two TensorCores.
    tm_eff = min(tm, _round_up(m, 8))
    if _round_up(m, tm_eff) // tm_eff < 2 and m > 8:
        tm_eff = _round_up(pl.cdiv(m, 2), 8)
    m_p = _round_up(m, tm_eff)

    # Only pad x when actually misaligned (no wrapper pass in the aligned case).
    x2 = x.reshape(m, dim)
    if (m_p, dim_p) != (m, dim):
        x2 = jnp.pad(x2, ((0, m_p - m), (0, dim_p - dim)))

    # Per-generation VMEM limit with headroom (v7x: 64 MiB physical -> ~51 MiB,
    # v5e/v6e: 128 MiB physical -> ~102 MiB).
    bf16_b, f32_b = 2, 4
    est = (2 * tm_eff * dim_p * f32_b            # x tile (double-buffered, f32)
           + 2 * dim_p * hidden_p * bf16_b       # W1 (resident)
           + 2 * hidden_p * f32_b                # b1
           + 2 * hidden_p * dim_p * bf16_b       # W2 (resident)
           + 2 * dim_p * f32_b                   # b2
           + 2 * tm_eff * dim_p * x.dtype.itemsize   # out tile
           + 2 * tm_eff * max(t_h, dim_p) * f32_b)   # in-body f32 temporaries
    try:
        vmem_cap = pltpu.get_tpu_info().vmem_capacity_bytes
    except Exception:
        vmem_cap = 64 << 20
    vmem_limit = int(min(max(est + (4 << 20), 32 << 20), int(vmem_cap * 0.8)))

    out2 = pl.pallas_call(
        functools.partial(feedforward_kernel, t_h=t_h),
        out_shape=jax.ShapeDtypeStruct((m_p, dim_p), x.dtype),
        grid_spec=pltpu.PrefetchScalarGridSpec(
            num_scalar_prefetch=0,
            grid=(m_p // tm_eff,),
            in_specs=[
                pl.BlockSpec((tm_eff, dim_p), lambda i: (i, 0)),    # x rows
                pl.BlockSpec((dim_p, hidden_p), lambda i: (0, 0)),  # W1 resident
                pl.BlockSpec((1, hidden_p), lambda i: (0, 0)),      # b1
                pl.BlockSpec((hidden_p, dim_p), lambda i: (0, 0)),  # W2 resident
                pl.BlockSpec((1, dim_p), lambda i: (0, 0)),         # b2
            ],
            out_specs=pl.BlockSpec((tm_eff, dim_p), lambda i: (i, 0)),
        ),
        compiler_params=pltpu.CompilerParams(
            dimension_semantics=("parallel",),
            vmem_limit_bytes=vmem_limit),
    )(x2, params["w1"], params["b1"], params["w2"], params["b2"])

    if (m_p, dim_p) != (m, dim):
        out2 = out2[:m, :dim]
    return out2.reshape(batch, seq, dim)


def feedforward_ref(x, w1, b1, w2, b2):
    h = jnp.einsum("bsd,dh->bsh", x, w1) + b1
    h = h * jax.nn.sigmoid(h)
    return jnp.einsum("bsh,hd->bsd", h, w2) + b2


if __name__ == "__main__":
    # Small shapes consistent with the module: dim=32, mult=4 -> hidden=128.
    batch, seq, dim, mult = 2, 8, 32, 4
    hidden = dim * mult

    key = jax.random.PRNGKey(0)
    kx, k1, k2, k3, k4 = jax.random.split(key, 5)

    x = jax.random.normal(kx, (batch, seq, dim), dtype=jnp.float32)
    # PyTorch nn.Linear weights are (out, in); we store the transpose (in, out)
    # so the kernel does x @ W.
    w1 = jax.random.normal(k1, (dim, hidden), dtype=jnp.float32) * (1.0 / dim ** 0.5)
    b1 = jax.random.normal(k2, (hidden,), dtype=jnp.float32) * 0.01
    w2 = jax.random.normal(k3, (hidden, dim), dtype=jnp.float32) * (1.0 / hidden ** 0.5)
    b2 = jax.random.normal(k4, (dim,), dtype=jnp.float32) * 0.01

    params = prepare_ff_params(w1, b1, w2, b2)       # once, at "model init"
    y = feedforward(x, params)
    y = jax.block_until_ready(y)

    y_ref = feedforward_ref(x, w1, b1, w2, b2)
    assert y.shape == (batch, seq, dim)
    # Tolerance reflects the bf16-operand / f32-accumulation precision contract.
    assert jnp.allclose(y, y_ref, atol=5e-2, rtol=5e-2), "mismatch vs reference"

    print("KERNEL_OK")
</pallas_src>

<mosaic_0001>
module attributes {stable_mosaic.version = 11 : i64} {
  func.func @feedforward_kernel(%arg0: i32, %arg1: memref<8x128xf32, #tpu.memory_space<vmem>>, %arg2: memref<128x128xbf16, #tpu.memory_space<vmem>>, %arg3: memref<1x128xf32, #tpu.memory_space<vmem>>, %arg4: memref<128x128xbf16, #tpu.memory_space<vmem>>, %arg5: memref<1x128xf32, #tpu.memory_space<vmem>>, %arg6: memref<8x128xf32, #tpu.memory_space<vmem>>) attributes {dimension_semantics = [#tpu.dimension_semantics<parallel>], iteration_bounds = array<i64: 2>, scalar_prefetch = 0 : i64, scratch_operands = 0 : i64, tpu.core_type = #tpu.core_type<tc>, window_params = [{transform_indices = @transform_0, window_bounds = array<i64: 8, 128>}, {pipeline_mode = #tpu.pipeline_mode<synchronous>, transform_indices = @transform_1, window_bounds = array<i64: 128, 128>}, {pipeline_mode = #tpu.pipeline_mode<synchronous>, transform_indices = @transform_2, window_bounds = array<i64: 1, 128>}, {pipeline_mode = #tpu.pipeline_mode<synchronous>, transform_indices = @transform_3, window_bounds = array<i64: 128, 128>}, {pipeline_mode = #tpu.pipeline_mode<synchronous>, transform_indices = @transform_4, window_bounds = array<i64: 1, 128>}, {transform_indices = @transform_5, window_bounds = array<i64: 8, 128>}]} {
    %c0 = arith.constant 0 : index
    %c0_0 = arith.constant 0 : index
    %0 = vector.load %arg1[%c0, %c0_0] : memref<8x128xf32, #tpu.memory_space<vmem>>, vector<8x128xf32>
    %1 = arith.truncf %0 : vector<8x128xf32> to vector<8x128xbf16>
    %c0_1 = arith.constant 0 : index
    %c0_2 = arith.constant 0 : index
    %2 = vector.load %arg5[%c0_1, %c0_2] : memref<1x128xf32, #tpu.memory_space<vmem>>, vector<1x128xf32>
    %3 = vector.shape_cast %2 : vector<1x128xf32> to vector<1x128xf32>
    %4 = vector.broadcast %3 : vector<1x128xf32> to vector<8x128xf32>
    %c0_3 = arith.constant 0 : index
    %c0_4 = arith.constant 0 : index
    %5 = vector.load %arg2[%c0_3, %c0_4] : memref<128x128xbf16, #tpu.memory_space<vmem>>, vector<128x128xbf16>
    %cst = arith.constant dense<0.000000e+00> : vector<8x128xf32>
    %6 = tpu.matmul %1, %5, %cst {dimension_numbers = #tpu.dot_dimension_numbers<[1], [0], [0], [1], [0, 0, 1, 1], [], []>} : vector<8x128xbf16>, vector<128x128xbf16>, vector<8x128xf32> -> vector<8x128xf32>
    %c0_5 = arith.constant 0 : index
    %c0_6 = arith.constant 0 : index
    %7 = vector.load %arg3[%c0_5, %c0_6] : memref<1x128xf32, #tpu.memory_space<vmem>>, vector<1x128xf32>
    %8 = vector.broadcast %7 : vector<1x128xf32> to vector<8x128xf32>
    %9 = arith.addf %6, %8 : vector<8x128xf32>
    %10 = arith.negf %9 : vector<8x128xf32>
    %11 = math.exp %10 : vector<8x128xf32>
    %cst_7 = arith.constant 1.000000e+00 : f32
    %12 = vector.broadcast %cst_7 : f32 to vector<8x128xf32>
    %13 = arith.addf %12, %11 : vector<8x128xf32>
    %14 = arith.divf %12, %13 : vector<8x128xf32>
    %15 = arith.mulf %9, %14 : vector<8x128xf32>
    %16 = arith.truncf %15 : vector<8x128xf32> to vector<8x128xbf16>
    %c0_8 = arith.constant 0 : index
    %c0_9 = arith.constant 0 : index
    %17 = vector.load %arg4[%c0_8, %c0_9] : memref<128x128xbf16, #tpu.memory_space<vmem>>, vector<128x128xbf16>
    %cst_10 = arith.constant dense<0.000000e+00> : vector<8x128xf32>
    %18 = tpu.matmul %16, %17, %cst_10 {dimension_numbers = #tpu.dot_dimension_numbers<[1], [0], [0], [1], [0, 0, 1, 1], [], []>} : vector<8x128xbf16>, vector<128x128xbf16>, vector<8x128xf32> -> vector<8x128xf32>
    %19 = arith.addf %4, %18 : vector<8x128xf32>
    %c0_11 = arith.constant 0 : index
    %c0_12 = arith.constant 0 : index
    %20 = vector.load %arg6[%c0_11, %c0_12] : memref<8x128xf32, #tpu.memory_space<vmem>>, vector<8x128xf32>
    tpu.vector_store %arg6[%c0_11, %c0_12], %19 {strides = array<i32>} : memref<8x128xf32, #tpu.memory_space<vmem>>, vector<8x128xf32>,
    return
  }
  func.func @transform_0(%arg0: i32) -> (i32, i32) {
    %c0_i32 = arith.constant 0 : i32
    %c0_i32_0 = arith.constant 0 : i32
    return %arg0, %c0_i32 : i32, i32
  }
  func.func @transform_1(%arg0: i32) -> (i32, i32) {
    %c0_i32 = arith.constant 0 : i32
    %c0_i32_0 = arith.constant 0 : i32
    %c0_i32_1 = arith.constant 0 : i32
    return %c0_i32, %c0_i32_0 : i32, i32
  }
  func.func @transform_2(%arg0: i32) -> (i32, i32) {
    %c0_i32 = arith.constant 0 : i32
    %c0_i32_0 = arith.constant 0 : i32
    %c0_i32_1 = arith.constant 0 : i32
    return %c0_i32, %c0_i32_0 : i32, i32
  }
  func.func @transform_3(%arg0: i32) -> (i32, i32) {
    %c0_i32 = arith.constant 0 : i32
    %c0_i32_0 = arith.constant 0 : i32
    %c0_i32_1 = arith.constant 0 : i32
    return %c0_i32, %c0_i32_0 : i32, i32
  }
  func.func @transform_4(%arg0: i32) -> (i32, i32) {
    %c0_i32 = arith.constant 0 : i32
    %c0_i32_0 = arith.constant 0 : i32
    %c0_i32_1 = arith.constant 0 : i32
    return %c0_i32, %c0_i32_0 : i32, i32
  }
  func.func @transform_5(%arg0: i32) -> (i32, i32) {
    %c0_i32 = arith.constant 0 : i32
    %c0_i32_0 = arith.constant 0 : i32
    return %arg0, %c0_i32 : i32, i32
  }
}

</mosaic_0001>

<bundles_post_ra>
// kernel: tpu_custom_call.1
= control target key start
LH: loop header
LB: loop body
LE: loop exit
PB: predicated region body
PF: predicated region fallthrough
CT: control target
= control target key end

     0   :  { %10 = vsyncpa [#allocation3], 0  ;;  %s1229_s0 = inlined_call_operand.hbm [shape: f32[16,128], index: 0, kind: input, shape index: {}]   ;;  %s1230_s1 = inlined_call_operand.hbm [shape: bf16[128,128], index: 1, kind: input, shape index: {}]   ;;  %s1231_s2 = inlined_call_operand.vmem [shape: f32[1,128], index: 2, kind: input, shape index: {}]   ;;  %s1232_s3 = inlined_call_operand.hbm [shape: bf16[128,128], index: 3, kind: input, shape index: {}]   ;;  %s1233_s4 = inlined_call_operand.vmem [shape: f32[1,128], index: 4, kind: input, shape index: {}]   ;;  %s1234_s5 = inlined_call_operand.hbm [shape: f32[16,128], index: 5, kind: output, shape index: {}]  }
   0x1   :  { %12 = vsyncpa [#allocation3 + $0x1], 0 }
   0x2   :  { %13 = vsyncpa [#allocation6], 0 }
   0x3   :  { %14 = vsyncpa [#allocation4], 0 }
   0x4   :  { %16 = vsyncpa [#allocation4 + $0x1], 0  ;;  %s987_s18 = smov 0   ;;  %s989_s19 = smov 0  }
   0x5   :  { %s991_s20 = smov 0   ;;  %s993_s21 = smov 0  }
   0x6 LB: > { %s1008_s22 = sadd.s32 4294967295, %s947_s21   ;;  %s607_s23 = sadd.s32 4294967294, %s947_s21   ;;  %s947_s21 = sphi %s993_s21, %s1254_s21   ;;  %s943_s20 = sphi %s991_s20, %s1253_s20   ;;  %s939_s19 = sphi %s989_s19, %s1252_s19   ;;  %s935_s18 = sphi %s987_s18, %s1251_s18  }
   0x7   : > { %p42_p0 = scmp.ne.s32.totalorder %s939_s19, %s935_s18  ;;  %p1235_p1 = scmp.eq.s32.totalorder %s1008_s22, 0 }
   0x8   : > { %p156_p3 = scmp.eq.s32.totalorder %s607_s23, 1  ;;  %p608_p5 = scmp.ge.s32.totalorder %s947_s21, 1 }
   0x9   : > { %p1017_p4 = por %p1235_p1, %p42_p0  ;;  %p163_p7 = scmp.lt.s32.totalorder %s947_s21, 3 }
   0xa   : > { %p1022_p6 = por %p156_p3, %p42_p0  ;;  %s949_s27 = smov [#allocation5]  }
   0xb   : > { %s1238_s24 = scalar_select %p1017_p4, 1, 0 }
   0xc   : > { %s1239_s25 = scalar_select %p1022_p6, 1, 0 }
   0xd   : > { %p1027_p8 = pnand %p608_p5, %p163_p7  ;;  %s175_s28 = sshll.u32 %s949_s27, 4  ;;  %s1031_s28 = int_to_ptr.vmem [resolvable:$true] %s175_s28 }
   0xe   : > { %s950_s30 = smov [#allocation7]   ;;  %s791_s9 = scalar_lea.hbm %s1230_s1, 1024 }
   0xf   : > { %p712_p9 = pneg %p1027_p8  ;;  %s191_s6 = sshll.u32 %s950_s30, 4  ;;  %s1042_s6 = int_to_ptr.vmem [resolvable:$true] %s191_s6 }
  0x10   : > { %p792_p12 = scmp.ne.s32.totalorder %s1230_s1, %s791_s9  ;;  %p798_p5 = scmp.lt.u32.totalorder %s791_s9, %s1230_s1 }
  0x11   : > { %p1038_p11 = pnand %p712_p9, %p1235_p1 }
  0x13   : > { %p793_p13 = pneg %p1038_p11 }
  0x15   : > { %p794_p0 = pnand %p793_p13, %p792_p12 }
  0x17   : > { %p795_p3 = pneg %p794_p0 }
  0x19   : > { %p800_p7 = pnand %p798_p5, %p795_p3 }
  0x1b   : > { %803 = shalt.err (!%p800_p7)
}
  0x1c   : > { %s804_s14 = scalar_lea.vmem %s1031_s28, 1024  ;;  %p812_p2 = scmp.lt.s32.totalorder %s1031_s28, %s1031_s28 }
  0x1d   : > { %p805_p9 = scmp.ne.s32.totalorder %s1031_s28, %s804_s14  ;;  %p813_p12 = scmp.lt.s32.totalorder %s804_s14, %s804_s14 }
  0x1f   : > { %p807_p10 = pnand %p805_p9, %p793_p13  ;;  %p814_p0 = por %p813_p12, %p812_p2 }
  0x21   : > { %p808_p1 = pneg %p807_p10 }
  0x23   : > { %p815_p6 = pnand %p814_p0, %p808_p1 }
  0x25   : > { %818 = shalt.err (!%p815_p6)
}
  0x26   : > { %s951_s15 = smov 64   ;;  %s952_s16 = smov 4  }
  0x27   : > { %715 = dma.hbm_to_vmem [thread:$0]  (!%p1038_p11), %s1230_s1, 1024, %s1031_s28, [#allocation6], %s951_s15, %s951_s15, %s952_s16  }
  0x28   : > { %s819_s7 = scalar_lea.hbm %s1232_s3, 1024 }
  0x29   : > { %p820_p2 = scmp.ne.s32.totalorder %s1232_s3, %s819_s7  ;;  %p826_p10 = scmp.lt.u32.totalorder %s819_s7, %s1232_s3 }
  0x2b   : > { %p822_p1 = pnand %p820_p2, %p793_p13 }
  0x2d   : > { %p823_p6 = pneg %p822_p1 }
  0x2f   : > { %p828_p3 = pnand %p826_p10, %p823_p6 }
  0x31   : > { %831 = shalt.err (!%p828_p3)
}
  0x32   : > { %s832_s28 = scalar_lea.vmem %s1042_s6, 1024  ;;  %p840_p12 = scmp.lt.s32.totalorder %s1042_s6, %s1042_s6 }
  0x33   : > { %p833_p5 = scmp.ne.s32.totalorder %s1042_s6, %s832_s28  ;;  %p841_p0 = scmp.lt.s32.totalorder %s832_s28, %s832_s28 }
  0x35   : > { %p835_p7 = pnand %p833_p5, %p793_p13  ;;  %p842_p2 = por %p841_p0, %p840_p12 }
  0x37   : > { %p836_p9 = pneg %p835_p7 }
  0x39   : > { %p843_p1 = pnand %p842_p2, %p836_p9 }
  0x3b   : > { %846 = shalt.err (!%p843_p1)
}
  0x3c   : > { %718 = dma.hbm_to_vmem [thread:$0]  (!%p1038_p11), %s1232_s3, 1024, %s1042_s6, [#allocation6], %s951_s15, %s951_s15, %s952_s16  }
  0x3d   : > { %s1097_s14 = sadd.s32 1, %s947_s21   ;;  %s29_s29 = sadd.s32 1, %s943_s20 }
  0x3e   : > { %s26_s17 = ssub.s32 %s947_s21, %s1097_s14  ;;  %p36_p13 = scmp.ne.s32.totalorder %s943_s20, %s939_s19 }
  0x3f   : > { %p27_p6 = scmp.eq.s32.totalorder %s26_s17, 0  ;;  %p37_p10 = scmp.eq.s32.totalorder %s947_s21, 0 }
  0x40   : > { %p1242_p3 = scmp.eq.s32.totalorder %s1008_s22, 1  ;;  %p729_p7 = scmp.lt.s32.totalorder %s947_s21, 2 }
  0x41   : > { %s1113_s27 = scalar_select %p27_p6, %s943_s20, %s29_s29  }
  0x42   : > { %p1107_p5 = por %p1242_p3, %p36_p13  ;;  %p38_p9 = por %p37_p10, %p36_p13 }
  0x43   : > { %s208_s30 = sand.u32 1, %s943_s20   ;;  %s613_s6 = sshll.u32 %s947_s21, 7 }
  0x44   : > { %s1243_s23 = scalar_select %p1107_p5, 1, 0 }
  0x45   : > { %s612_s7 = sshll.u32 %s208_s30, 3  ;;  %s1120_s8 = scalar_lea.hbm %s1229_s0, %s613_s6 }
  0x46   : > { %s212_s9 = scalar_lea.vmem [#allocation2], %s612_s7  ;;  %p1124_p11 = pnand %p729_p7, %p38_p9 }
  0x47   : > { %s219_s10 = sshll.u32 %s212_s9, 4  ;;  %s209_s28 = scalar_lea.sflag [#allocation3], %s208_s30  ;;  %s1122_s10 = int_to_ptr.vmem [resolvable:$true] %s219_s10 }
  0x48   : > { %s847_s12 = scalar_lea.hbm %s1120_s8, 128  ;;  %p849_p0 = pneg %p1124_p11 }
  0x49   : > { %p848_p12 = scmp.ne.s32.totalorder %s1120_s8, %s847_s12  ;;  %s852_s17 = scalar_lea.hbm %s1229_s0, 256 }
  0x4a   : > { %p853_p13 = scmp.lt.u32.totalorder %s1120_s8, %s1229_s0  ;;  %p854_p6 = scmp.lt.u32.totalorder %s852_s17, %s847_s12 }
  0x4b   : > { %p850_p2 = pnand %p849_p0, %p848_p12  ;;  %p856_p3 = scmp.lt.u32.totalorder %s847_s12, %s1120_s8 }
  0x4c   : > { %p855_p10 = por %p854_p6, %p853_p13 }
  0x4d   : > { %p851_p1 = pneg %p850_p2 }
  0x4e   : > { %p857_p7 = por %p856_p3, %p855_p10 }
  0x50   : > { %p858_p9 = pnand %p857_p7, %p851_p1 }
  0x52   : > { %861 = shalt.err (!%p858_p9)
}
  0x53   : > { %s862_s30 = scalar_lea.vmem %s1122_s10, 128  ;;  %s953_s15 = smov [#allocation2]  }
  0x54   : > { %p863_p12 = scmp.ne.s32.totalorder %s1122_s10, %s862_s30  ;;  %s867_s16 = sshll.u32 %s953_s15, 4  ;;  %s868_s16 = int_to_ptr.vmem [resolvable:$false] %s867_s16 }
  0x55   : > { %s869_s9 = scalar_lea.vmem %s868_s16, 256  ;;  %p870_p4 = scmp.lt.s32.totalorder %s1122_s10, %s868_s16 }
  0x56   : > { %p865_p2 = pnand %p863_p12, %p849_p0  ;;  %p871_p13 = scmp.lt.s32.totalorder %s869_s9, %s862_s30 }
  0x58   : > { %p866_p5 = pneg %p865_p2  ;;  %p872_p6 = por %p871_p13, %p870_p4 }
  0x5a   : > { %p873_p10 = pnand %p872_p6, %p866_p5 }
  0x5c   : > { %876 = shalt.err (!%p873_p10)
}
  0x5d   : > { %722 = dma.hbm_to_vmem [thread:$0]  (!%p1124_p11), %s1120_s8, 128, %s1122_s10, %s209_s28  }
  0x5e   : > { %228 = sbr.rel (%p1027_p8) target bundleno = 611 (0x263), region = 40  ;;  %s1156_s12 = sand.u32 (!%p1027_p8), 1, %s939_s19  }
  0x5f   : > { %s615_s13 = sshll.u32 (!%p1027_p8), %s1156_s12, 3  ;;  %s231_s29 = scalar_lea.sflag (!%p1027_p8), [#allocation3], %s1156_s12 }
  0x60   : > { %s1162_s17 = scalar_lea.vmem (!%p1027_p8), [#allocation2], %s615_s13  ;;  %p1245_p4 = scmp.ne.s32.totalorder (!%p1027_p8), %s1238_s24, 0 }
  0x65   : > { %922 = dma.done.wait (%p1245_p4), %s231_s29, 128  }
  0x66   : > { %924 = vsyncadd (%p1245_p4), %s231_s29, 4294967168  ;;  %p1246_p5 = scmp.eq.s32.totalorder %s1008_s22, 0 }
  0x68   : > { %926 = dma.done.wait (%p1246_p5), [#allocation6], 2048   ;;  %p1247_p8 = pmov %p1246_p5 }
  0x69   : > { %v954_v0 = vmov 0.0   ;;  %vm955_vm0 = vmmov 0   ;;  %v771_v1 = vld [vmem:[#allocation5] sm:$0xff]   ;;  %v772_v2 = vld [vmem:[#allocation5 + $0x8] sm:$0xff]   ;;  %v773_v3 = vld [vmem:[#allocation5 + $0x10] sm:$0xff]   ;;  %s639_s11 = sshll.u32 %s1008_s22, 7 }
  0x6a   : > { %928 = vsyncadd (%p1247_p8), [#allocation6], 4294965248  ;;  %660 = vmatprep.subr.bf16.mxu0 %v954_v0  ;;  %676 = vmatprep.mubr.msk.bf16.mxu0 %vm955_vm0, %v954_v0  ;;  %v774_v4 = vld [vmem:[#allocation5 + $0x18] sm:$0xff]   ;;  %v775_v5 = vld [vmem:[#allocation5 + $0x20] sm:$0xff]   ;;  %s268_s28 = scalar_lea.vmem [#allocation8], %s615_s13  ;;  %s1185_s15 = scalar_lea.hbm %s1234_s5, %s639_s11 }
  0x6b   : > { %680 = vmatprep.subr.bf16.mxu1 %v954_v0  ;;  %696 = vmatprep.mubr.msk.bf16.mxu1 %vm955_vm0, %v954_v0  ;;  %v776_v6 = vld [vmem:[#allocation5 + $0x28] sm:$0xff]   ;;  %v777_v7 = vld [vmem:[#allocation5 + $0x30] sm:$0xff]   ;;  %v778_v8 = vld [vmem:[#allocation5 + $0x38] sm:$0xff]   ;;  %s518_s7 = sshll.u32 %s268_s28, 4  ;;  %s505_s22 = scalar_lea.sflag [#allocation4], %s1156_s12  ;;  %s1187_s7 = int_to_ptr.vmem [resolvable:$true] %s518_s7 }
  0x6c   : > { %661 = vmatpush3.bf16.msra.mxu0 %v771_v1  ;;  %v270_v9 = vld [vmem:[%s1162_s17] sm:$0xff]  ;;  %v779_v11 = vld [vmem:[#allocation7] sm:$0xff]   ;;  %v780_v12 = vld [vmem:[#allocation7 + $0x8] sm:$0xff]   ;;  %s877_s16 = scalar_lea.vmem %s1187_s7, 128  ;;  %p1248_p0 = scmp.ne.s32.totalorder %s1243_s23, 0 }
  0x6d   : > { %662 = vmatprep.subr.bf16.mxu0 %v954_v0  ;;  %v271_v10 = vpack.c.bf16 %v270_v9, %v270_v9  ;;  %681 = vmatpush3.bf16.msra.mxu1 %v779_v11  ;;  %v781_v13 = vld [vmem:[#allocation7 + $0x10] sm:$0xff]   ;;  %v782_v14 = vld [vmem:[#allocation7 + $0x18] sm:$0xff]   ;;  %v783_v15 = vld [vmem:[#allocation7 + $0x20] sm:$0xff]   ;;  %p878_p11 = scmp.ne.s32.totalorder %s1187_s7, %s877_s16  ;;  %s956_s9 = smov [#allocation8]  }
  0x6e   : > { %682 = vmatprep.subr.bf16.mxu1 %v954_v0  ;;  %v784_v16 = vld [vmem:[#allocation7 + $0x28] sm:$0xff]   ;;  %v785_v17 = vld [vmem:[#allocation7 + $0x30] sm:$0xff]   ;;  %v786_v18 = vld [vmem:[#allocation7 + $0x38] sm:$0xff]   ;;  %s881_s13 = sshll.u32 %s956_s9, 4  ;;  %s882_s13 = int_to_ptr.vmem [resolvable:$false] %s881_s13 }
  0x6f   : > { %v620_v19 = vld [vmem:[%s1231_s2] ss:$0 sm:$0xff]  ;;  %p879_p1 = pnand %p878_p11, %p1248_p0  ;;  %s883_s29 = scalar_lea.vmem %s882_s13, 256 }
  0x70   : > { %663 = vmatpush3.bf16.msra.mxu0 %v772_v2  ;;  %v619_v31 = vld [vmem:[%s1233_s4] ss:$0 sm:$0xff]  ;;  %p884_p7 = scmp.lt.s32.totalorder %s1187_s7, %s882_s13  ;;  %p885_p9 = scmp.lt.s32.totalorder %s883_s29, %s877_s16 }
  0x71   : > { %664 = vmatprep.subr.bf16.mxu0 %v954_v0  ;;  %683 = vmatpush3.bf16.msra.mxu1 %v780_v12  ;;  %p880_p3 = pneg %p879_p1 }
  0x72   : > { %684 = vmatprep.subr.bf16.mxu1 %v954_v0  ;;  %p886_p12 = por %p885_p9, %p884_p7 }
  0x74   : > { %665 = vmatpush3.bf16.msra.mxu0 %v773_v3  ;;  %p887_p2 = pnand %p886_p12, %p880_p3 }
  0x75   : > { %666 = vmatprep.subr.bf16.mxu0 %v954_v0  ;;  %685 = vmatpush3.bf16.msra.mxu1 %v781_v13 }
  0x76   : > { %686 = vmatprep.subr.bf16.mxu1 %v954_v0 }
  0x78   : > { %667 = vmatpush3.bf16.msra.mxu0 %v774_v4 }
  0x79   : > { %668 = vmatprep.subr.bf16.mxu0 %v954_v0  ;;  %687 = vmatpush3.bf16.msra.mxu1 %v782_v14 }
  0x7a   : > { %688 = vmatprep.subr.bf16.mxu1 %v954_v0 }
  0x7c   : > { %669 = vmatpush3.bf16.msra.mxu0 %v775_v5 }
  0x7d   : > { %670 = vmatprep.subr.bf16.mxu0 %v954_v0  ;;  %689 = vmatpush3.bf16.msra.mxu1 %v783_v15 }
  0x7e   : > { %690 = vmatprep.subr.bf16.mxu1 %v954_v0 }
  0x80   : > { %671 = vmatpush3.bf16.msra.mxu0 %v776_v6 }
  0x81   : > { %672 = vmatprep.subr.bf16.mxu0 %v954_v0  ;;  %691 = vmatpush3.bf16.msra.mxu1 %v784_v16 }
  0x82   : > { %692 = vmatprep.subr.bf16.mxu1 %v954_v0 }
  0x84   : > { %673 = vmatpush3.bf16.msra.mxu0 %v777_v7 }
  0x85   : > { %674 = vmatprep.subr.bf16.mxu0 %v954_v0  ;;  %693 = vmatpush3.bf16.msra.mxu1 %v785_v17 }
  0x86   : > { %694 = vmatprep.subr.bf16.mxu1 %v954_v0 }
  0x88   : > { %675 = vmatpush3.bf16.msra.mxu0 %v778_v8 }
  0x89   : > { %695 = vmatpush3.bf16.msra.mxu1 %v786_v18 }
  0x8b   : > { %677 = vmatmul.mubr.bf16.vlgmr.msra.gmra.mrb[0].mxu0 %v271_v10 }
 0x15e   : > { %v384_v20 = vpop.f32.mrb[0].mxu0 }
 0x15f   : > { %v385_v21 = vadd.f32 %v620_v19, %v384_v20  ;;  %v678_v22 = vpop.f32.mrb[1].mxu0 }
 0x160   : > { %v387_v23 = vpop.f32.mrb[2].mxu0 }
 0x161   : > { %v629_v24 = vmul.f32 -1.442695, %v385_v21  ;;  %v679_v25 = vpop.f32.mrb[3].mxu0 }
 0x163   : > { %787 = vpow2.f32 %v629_v24 }
 0x16d   : > { %v788_v26 = vpop.eup %787 }
 0x16e   : > { %v393_v27 = vadd.f32 1.0, %v788_v26 }
 0x170   : > { %789 = vrcp.f32 %v393_v27 }
 0x17a   : > { %v790_v28 = vpop.eup %789 }
 0x17b   : > { %v396_v29 = vmul.f32 %v790_v28, %v385_v21 }
 0x17d   : > { %v397_v30 = vpack.c.bf16 %v396_v29, %v396_v29 }
 0x17f   : > { %697 = vmatmul.mubr.bf16.vlgmr.msra.gmra.mrb[0].mxu1 %v397_v30 }
 0x252   : > { %v496_v32 = vpop.f32.mrb[0].mxu1 }
 0x253   : > { %v502_v33 = vadd.f32 %v619_v31, %v496_v32  ;;  %v698_v34 = vpop.f32.mrb[1].mxu1 }
 0x254   : > { %v499_v35 = vpop.f32.mrb[2].mxu1 }
 0x255   : > { %503 = vst [vmem:[%s268_s28] sm:$0xff] %v502_v33  ;;  %v699_v36 = vpop.f32.mrb[3].mxu1 }
 0x256   : > { %890 = shalt.err (!%p887_p2)
}
 0x257   : > { %s891_s12 = scalar_lea.hbm %s1185_s15, 128  ;;  %s895_s26 = scalar_lea.hbm %s1234_s5, 256 }
 0x258   : > { %p892_p13 = scmp.ne.s32.totalorder %s1185_s15, %s891_s12  ;;  %p896_p4 = scmp.lt.u32.totalorder %s1185_s15, %s1234_s5 }
 0x259   : > { %p897_p5 = scmp.lt.u32.totalorder %s895_s26, %s891_s12  ;;  %p899_p11 = scmp.lt.u32.totalorder %s891_s12, %s1185_s15 }
 0x25a   : > { %p893_p6 = pnand %p892_p13, %p1248_p0 }
 0x25b   : > { %p898_p8 = por %p897_p5, %p896_p4 }
 0x25c   : > { %p894_p10 = pneg %p893_p6 }
 0x25d   : > { %p900_p1 = por %p899_p11, %p898_p8 }
 0x25f   : > { %p901_p3 = pnand %p900_p1, %p894_p10 }
 0x261   : > { %904 = shalt.err (!%p901_p3)
}
 0x262   : > { %710 = dma.vmem_to_hbm [thread:$0]  (%p1248_p0), %s1187_s7, 128, %s1185_s15, %s505_s22  }
 0x263 PF: > { %s530_s11 = sand.u32 1, %s935_s18   ;;  %p1249_p7 = scmp.ne.s32.totalorder %s1239_s25, 0 }
 0x264   : > { %p1250_p9 = scmp.ge.s32.totalorder %s947_s21, 2  ;;  %s531_s28 = scalar_lea.sflag [#allocation4], %s530_s11 }
 0x266   : > { %p724_p12 = pnand %p1250_p9, %p1249_p7 }
 0x268   : > { %930 = dma.done.wait (!%p724_p12), %s531_s28, 128  }
 0x269   : > { %932 = vsyncadd (!%p724_p12), %s531_s28, 4294967168  ;;  %p19_p2 = scmp.ge.s32.totalorder %s1097_s14, 4   ;;  %s1251_s18 = smov %s939_s19 }
 0x26a   : > { %s1252_s19 = smov %s943_s20  ;;  %s1253_s20 = smov %s1113_s27 }
 0x26b   : > { %s1254_s21 = smov %s1097_s14  ;;  %21 = sbr.rel (!%p19_p2) target bundleno = 6 (0x6), region = 93 }
 0x272   :  { %536 = vsyncpa [#allocation3], 1 }
 0x273   :  { %538 = vsyncpa [#allocation3 + $0x1], 1 }
 0x274   :  { %539 = vsyncpa [#allocation6], 1 }
 0x275   :  { %540 = vsyncpa [#allocation4], 1 }
 0x276   :  { %542 = vsyncpa [#allocation4 + $0x1], 1 }

</bundles_post_ra>
